<compile_context>
chip_gen: v5e
topology: v5e:2x2
jax: 0.10.0
libtpu: 0.0.40
codegen_flags: <defaults>
</compile_context>

<pallas_src>
import functools

import jax
import jax.numpy as jnp
from jax.experimental import pallas as pl
from jax.experimental.pallas import tpu as pltpu

_LANE = 128


def _round_up(v, m):
    return ((v + m - 1) // m) * m


def _cdiv(a, b):
    return (a + b - 1) // b


def _vmem_sizes(budget_override=None, limit_override=None):
    """Per-generation VMEM sizing (128 MiB on v5e/v6e, 64 MiB on v7x)."""
    phys = 64 * 1024 * 1024  # conservative fallback (v7x per-TC)
    try:
        info = pltpu.get_tpu_info()
        cap = getattr(info, "vmem_capacity_bytes", None)
        if cap:
            phys = int(cap)
    except Exception:
        pass
    limit = int(limit_override) if limit_override else min(
        int(phys * 0.85), phys - 8 * 1024 * 1024)
    budget = int(budget_override) if budget_override else min(
        int(phys * 0.65), limit - 4 * 1024 * 1024)
    return budget, limit


# ----------------------------------------------------------------------------
# Kernels
# ----------------------------------------------------------------------------

def _memory_kernel_resident(x_ref, mem_ref, out_ref, *,
                            shrink_thres, apply_shrink, mxu_dtype):
    """Memory matrix fully VMEM-resident; one grid step does the whole row-block."""
    x = x_ref[...]        # (tile_n, C_pad)
    mem = mem_ref[...]    # (M_pad, C_pad), resident across the grid
    if mxu_dtype is not None:
        x = x.astype(mxu_dtype)
        mem = mem.astype(mxu_dtype)

    # att = x @ mem.T -> (tile_n, M_pad), f32 accumulation on the MXU.
    att = jax.lax.dot_general(
        x, mem,
        dimension_numbers=(((1,), (1,)), ((), ())),
        preferred_element_type=jnp.float32,
    )

    if apply_shrink:
        # hard_shrink_relu(att, l) == where(att > l, att, 0) (away from the
        # eps-smoothed boundary of the PyTorch formula).
        att = jnp.where(att > shrink_thres, att, 0.0)

    out = jnp.dot(att.astype(mem.dtype), mem, preferred_element_type=jnp.float32)

    if apply_shrink:
        # L1 normalization commutes with the second matmul -> scale out rows.
        denom = jnp.sum(att, axis=1, keepdims=True)
        out = out * pl.reciprocal(jnp.maximum(denom, 1e-12), approx=True)

    out_ref[...] = out.astype(out_ref.dtype)


def _memory_kernel_tiled(x_ref, mem_ref, out_ref, acc_ref, denom_ref, *,
                         shrink_thres, apply_shrink, mxu_dtype):
    """Large-M path: accumulate out and the L1 denominator over M chunks."""
    m_idx = pl.program_id(1)

    @pl.when(m_idx == 0)
    def _init():
        acc_ref[...] = jnp.zeros_like(acc_ref)
        denom_ref[...] = jnp.zeros_like(denom_ref)

    x = x_ref[...]        # (tile_n, C_pad)
    mem = mem_ref[...]    # (tile_m, C_pad)
    if mxu_dtype is not None:
        x = x.astype(mxu_dtype)
        mem = mem.astype(mxu_dtype)

    att = jax.lax.dot_general(
        x, mem,
        dimension_numbers=(((1,), (1,)), ((), ())),
        preferred_element_type=jnp.float32,
    )

    if apply_shrink:
        att = jnp.where(att > shrink_thres, att, 0.0)
        # Lane-dense (tile_n, 128) scratch: broadcast the row-sum across lanes so
        # the update is a full unmasked store.
        denom_ref[...] = denom_ref[...] + jnp.sum(att, axis=1, keepdims=True)

    acc_ref[...] += jnp.dot(att.astype(mem.dtype), mem,
                            preferred_element_type=jnp.float32)

    @pl.when(m_idx == pl.num_programs(1) - 1)
    def _finalize():
        if apply_shrink:
            inv = pl.reciprocal(
                jnp.maximum(denom_ref[...][:, :1], 1e-12), approx=True)
            out_ref[...] = (acc_ref[...] * inv).astype(out_ref.dtype)
        else:
            out_ref[...] = acc_ref[...].astype(out_ref.dtype)


# ----------------------------------------------------------------------------
# Wrapper
# ----------------------------------------------------------------------------

def memory_forward(x, mem_matrix, shrink_thres=0.0025, *,
                   tile_n=None, tile_m=None,
                   use_bf16_matmul=False,
                   max_resident_mem_bytes=8 * 1024 * 1024,
                   vmem_budget_bytes=None,
                   vmem_limit_bytes=None):
    """Pallas implementation of Memory.forward.

    x          : [N, C] query features
    mem_matrix : [M, C] memory slots
    returns    : dict(out=[N, C])
    """
    N, C = x.shape
    M, C2 = mem_matrix.shape
    assert C == C2, "slot_dim mismatch"

    if (shrink_thres > 0 and isinstance(shrink_thres, int)
            and not isinstance(shrink_thres, bool)):
        # TODO(synk): gumbel_softmax shrinkage (int threshold) needs a per-row
        # softmax + top-k over the full M axis; not implemented in this kernel.
        raise NotImplementedError("gumbel_softmax path not implemented")
    apply_shrink = bool(shrink_thres > 0)

    budget, limit = _vmem_sizes(vmem_budget_bytes, vmem_limit_bytes)

    x_bytes = x.dtype.itemsize
    mem_bytes = mem_matrix.dtype.itemsize
    out_bytes = x_bytes
    sublane = 8 if x_bytes >= 4 else 16

    # Lane-dense padding for the contraction / output dims; zero padding is a
    # mathematical no-op for this forward pass.
    C_pad = _round_up(C, _LANE)
    M_pad128 = _round_up(M, _LANE)

    mxu_dtype = jnp.bfloat16 if (use_bf16_matmul and x.dtype == jnp.float32) else None

    # --- tile_n: balanced ceil-split of N (padding bounded by a sublane);
    #     force >= 2 N tiles when N >= 256 so v7x's two TensorCores both work.
    user_tile_n = tile_n is not None
    if not user_tile_n:
        min_chunks = 2 if N >= 256 else 1
        n_chunks = max(_cdiv(N, 512), min_chunks)
        tile_n = max(sublane, _round_up(_cdiv(N, n_chunks), sublane))

    kernel_kwargs = dict(shrink_thres=float(shrink_thres),
                         apply_shrink=apply_shrink, mxu_dtype=mxu_dtype)

    # ------------------------------------------------------------------
    # Resident-memory path: keep the whole memory matrix in VMEM and drop
    # the M grid axis entirely (also the single-grid-step small-problem path).
    # ------------------------------------------------------------------
    mem_total_bytes = M_pad128 * C_pad * mem_bytes
    resident = (tile_m is None
                and mem_total_bytes <= min(max_resident_mem_bytes, budget // 3))

    if resident:
        M_pad = M_pad128

        def fits(tn):
            f = 2 * M_pad * C_pad * mem_bytes      # resident mem (worst-case 2 bufs)
            f += 2 * tn * C_pad * x_bytes          # x tile, double buffered
            f += 2 * tn * C_pad * out_bytes        # out tile, double buffered
            f += tn * C_pad * 4                    # f32 second-matmul result
            f += 3 * tn * M_pad * 4                # att f32 intermediates
            return f <= budget

        tn = tile_n
        if not user_tile_n:
            while tn > sublane and not fits(tn):
                tn = max(sublane, _round_up(tn // 2, sublane))

        if user_tile_n or fits(tn):
            N_pad = _round_up(N, tn)
            x_p = jnp.pad(x, ((0, N_pad - N), (0, C_pad - C)))
            mem_p = jnp.pad(mem_matrix, ((0, M_pad - M), (0, C_pad - C)))

            kernel = functools.partial(_memory_kernel_resident, **kernel_kwargs)
            out_p = pl.pallas_call(
                kernel,
                out_shape=jax.ShapeDtypeStruct((N_pad, C_pad), x.dtype),
                grid_spec=pltpu.PrefetchScalarGridSpec(
                    num_scalar_prefetch=0,
                    grid=(N_pad // tn,),
                    in_specs=[
                        pl.BlockSpec((tn, C_pad), lambda i: (i, 0)),     # x tile
                        pl.BlockSpec((M_pad, C_pad), lambda i: (0, 0)),  # mem (resident)
                    ],
                    out_specs=pl.BlockSpec((tn, C_pad), lambda i: (i, 0)),
                ),
                compiler_params=pltpu.CompilerParams(
                    dimension_semantics=("parallel",),
                    vmem_limit_bytes=limit,
                ),
            )(x_p, mem_p)
            return dict(out=out_p[:N, :C])
        # else: memory matrix too large for the budget -> fall through to tiled path.

    # ------------------------------------------------------------------
    # Tiled path: stream the memory matrix in M chunks, accumulate out + L1 denom.
    # ------------------------------------------------------------------
    user_tile_m = tile_m is not None
    if not user_tile_m:
        m_chunks = max(_cdiv(M, 512), 1)
        tile_m = max(_LANE, _round_up(_cdiv(M, m_chunks), _LANE))

    def footprint(tn, tm):
        f = 2 * tn * C_pad * x_bytes      # x tile, double buffered
        f += 2 * tm * C_pad * mem_bytes   # mem chunk, double buffered
        f += 2 * tn * C_pad * out_bytes   # out tile, double buffered
        f += tn * C_pad * 4               # f32 output accumulator scratch
        f += tn * _LANE * 4               # denom scratch
        f += 3 * tn * tm * 4              # att f32 intermediates
        return f

    while footprint(tile_n, tile_m) > budget:
        can_n = (not user_tile_n) and tile_n > sublane
        can_m = (not user_tile_m) and tile_m > _LANE
        if can_n and (tile_n >= tile_m or not can_m):
            tile_n = max(sublane, _round_up(tile_n // 2, sublane))
        elif can_m:
            tile_m = max(_LANE, _round_up(tile_m // 2, _LANE))
        else:
            break

    N_pad = _round_up(N, tile_n)
    M_pad = _round_up(M, tile_m)

    x_p = jnp.pad(x, ((0, N_pad - N), (0, C_pad - C)))
    mem_p = jnp.pad(mem_matrix, ((0, M_pad - M), (0, C_pad - C)))

    kernel = functools.partial(_memory_kernel_tiled, **kernel_kwargs)
    out_p = pl.pallas_call(
        kernel,
        out_shape=jax.ShapeDtypeStruct((N_pad, C_pad), x.dtype),
        grid_spec=pltpu.PrefetchScalarGridSpec(
            num_scalar_prefetch=0,
            grid=(N_pad // tile_n, M_pad // tile_m),   # reduction axis last
            in_specs=[
                pl.BlockSpec((tile_n, C_pad), lambda i, m: (i, 0)),  # x tile
                pl.BlockSpec((tile_m, C_pad), lambda i, m: (m, 0)),  # mem chunk
            ],
            out_specs=pl.BlockSpec((tile_n, C_pad), lambda i, m: (i, 0)),
            scratch_shapes=[
                pltpu.VMEM((tile_n, C_pad), jnp.float32),  # output accumulator
                pltpu.VMEM((tile_n, _LANE), jnp.float32),  # L1 denom (lane-dense)
            ],
        ),
        compiler_params=pltpu.CompilerParams(
            dimension_semantics=("parallel", "arbitrary"),
            vmem_limit_bytes=limit,
        ),
    )(x_p, mem_p)

    return dict(out=out_p[:N, :C])


# ----------------------------------------------------------------------------
# Pure-JAX reference (mirrors the PyTorch float shrink path) and test driver.
# ----------------------------------------------------------------------------

def _memory_reference(x, mem, shrink_thres):
    att = x.astype(jnp.float32) @ mem.astype(jnp.float32).T
    if shrink_thres > 0:
        shifted = att - shrink_thres
        att = jnp.maximum(shifted, 0.0) * att / (jnp.abs(shifted) + 1e-12)
        att = att / jnp.maximum(
            jnp.sum(jnp.abs(att), axis=1, keepdims=True), 1e-12)
    return (att @ mem.astype(jnp.float32)).astype(x.dtype)


if __name__ == "__main__":
    def run_case(N, num_slots, slot_dim, shrink_thres, key, **kwargs):
        kx, kmem = jax.random.split(key)
        # Matches reset_parameters(): uniform(-stdv, stdv), stdv = 1/sqrt(slot_dim)
        stdv = 1.0 / (slot_dim ** 0.5)
        mem_matrix = jax.random.uniform(
            kmem, (num_slots, slot_dim), dtype=jnp.float32,
            minval=-stdv, maxval=stdv)
        x = jax.random.normal(kx, (N, slot_dim), dtype=jnp.float32)

        result = memory_forward(x, mem_matrix, shrink_thres, **kwargs)
        out = jax.block_until_ready(result["out"])

        assert out.shape == x.shape and out.dtype == x.dtype
        assert bool(jnp.all(jnp.isfinite(out)))
        ref = _memory_reference(x, mem_matrix, shrink_thres)
        assert bool(jnp.allclose(out, ref, rtol=1e-2, atol=1e-3)), (
            "max abs diff vs reference: "
            + str(float(jnp.max(jnp.abs(out - ref)))))

    key = jax.random.PRNGKey(0)
    k1, k2 = jax.random.split(key)

    # Small module-like shapes: exercises the resident-memory single-step fast path.
    run_case(N=16, num_slots=32, slot_dim=64, shrink_thres=0.0025, key=k1)

    # Force the tiled/accumulating path (2 M chunks) to cover that kernel too.
    run_case(N=48, num_slots=160, slot_dim=96, shrink_thres=0.0025, key=k2,
             max_resident_mem_bytes=0, tile_m=128)

    print("KERNEL_OK")
</pallas_src>

<mosaic_0001>
module attributes {stable_mosaic.version = 11 : i64} {
  func.func @_memory_kernel_resident(%arg0: i32, %arg1: memref<16x128xf32, #tpu.memory_space<vmem>>, %arg2: memref<128x128xf32, #tpu.memory_space<vmem>>, %arg3: memref<16x128xf32, #tpu.memory_space<vmem>>) attributes {dimension_semantics = [#tpu.dimension_semantics<parallel>], iteration_bounds = array<i64: 1>, scalar_prefetch = 0 : i64, scratch_operands = 0 : i64, tpu.core_type = #tpu.core_type<tc>, window_params = [{transform_indices = @transform_0, window_bounds = array<i64: 16, 128>}, {pipeline_mode = #tpu.pipeline_mode<synchronous>, transform_indices = @transform_1, window_bounds = array<i64: 128, 128>}, {transform_indices = @transform_2, window_bounds = array<i64: 16, 128>}]} {
    %c0 = arith.constant 0 : index
    %c0_0 = arith.constant 0 : index
    %0 = vector.load %arg1[%c0, %c0_0] : memref<16x128xf32, #tpu.memory_space<vmem>>, vector<16x128xf32>
    %c0_1 = arith.constant 0 : index
    %c0_2 = arith.constant 0 : index
    %1 = vector.load %arg2[%c0_1, %c0_2] : memref<128x128xf32, #tpu.memory_space<vmem>>, vector<128x128xf32>
    %cst = arith.constant dense<0.000000e+00> : vector<16x128xf32>
    %2 = tpu.matmul %0, %1, %cst {dimension_numbers = #tpu.dot_dimension_numbers<[1], [1], [0], [0], [0, 0, 1, 0], [], []>} : vector<16x128xf32>, vector<128x128xf32>, vector<16x128xf32> -> vector<16x128xf32>
    %cst_3 = arith.constant 2.500000e-03 : f32
    %3 = vector.broadcast %cst_3 : f32 to vector<16x128xf32>
    %4 = arith.cmpf ogt, %2, %3 : vector<16x128xf32>
    %cst_4 = arith.constant 0.000000e+00 : f32
    %5 = vector.broadcast %cst_4 : f32 to vector<16x128xf32>
    %6 = arith.select %4, %2, %5 : vector<16x128xi1>, vector<16x128xf32>
    %cst_5 = arith.constant dense<0.000000e+00> : vector<16x128xf32>
    %7 = tpu.matmul %6, %1, %cst_5 {dimension_numbers = #tpu.dot_dimension_numbers<[1], [0], [0], [1], [0, 0, 1, 1], [], []>} : vector<16x128xf32>, vector<128x128xf32>, vector<16x128xf32> -> vector<16x128xf32>
    %cst_6 = arith.constant dense<0.000000e+00> : vector<16xf32>
    %8 = vector.multi_reduction <add>, %6, %cst_6 [1] : vector<16x128xf32> to vector<16xf32>
    %9 = vector.shape_cast %8 : vector<16xf32> to vector<16x1xf32>
    %cst_7 = arith.constant 9.99999996E-13 : f32
    %10 = vector.broadcast %cst_7 : f32 to vector<16x1xf32>
    %11 = arith.maximumf %9, %10 : vector<16x1xf32>
    %12 = tpu.reciprocal %11 {approx = true} : vector<16x1xf32> -> vector<16x1xf32>
    %13 = vector.broadcast %12 : vector<16x1xf32> to vector<16x128xf32>
    %14 = arith.mulf %7, %13 : vector<16x128xf32>
    %c0_8 = arith.constant 0 : index
    %c0_9 = arith.constant 0 : index
    %15 = vector.load %arg3[%c0_8, %c0_9] : memref<16x128xf32, #tpu.memory_space<vmem>>, vector<16x128xf32>
    tpu.vector_store %arg3[%c0_8, %c0_9], %14 {strides = array<i32>} : memref<16x128xf32, #tpu.memory_space<vmem>>, vector<16x128xf32>,
    return
  }
  func.func @transform_0(%arg0: i32) -> (i32, i32) {
    %c0_i32 = arith.constant 0 : i32
    %c0_i32_0 = arith.constant 0 : i32
    return %arg0, %c0_i32 : i32, i32
  }
  func.func @transform_1(%arg0: i32) -> (i32, i32) {
    %c0_i32 = arith.constant 0 : i32
    %c0_i32_0 = arith.constant 0 : i32
    %c0_i32_1 = arith.constant 0 : i32
    return %c0_i32, %c0_i32_0 : i32, i32
  }
  func.func @transform_2(%arg0: i32) -> (i32, i32) {
    %c0_i32 = arith.constant 0 : i32
    %c0_i32_0 = arith.constant 0 : i32
    return %arg0, %c0_i32 : i32, i32
  }
}

</mosaic_0001>

<bundles_post_ra>
// kernel: tpu_custom_call.1
= control target key start
LH: loop header
LB: loop body
LE: loop exit
PB: predicated region body
PF: predicated region fallthrough
CT: control target
= control target key end

     0   :  { %7 = vsyncpa [#allocation3], 0  ;;  %s287_s0 = inlined_call_operand.hbm [shape: f32[16,128], index: 0, kind: input, shape index: {}]   ;;  %s288_s1 = inlined_call_operand.hbm [shape: f32[128,128], index: 1, kind: input, shape index: {}]   ;;  %s289_s2 = inlined_call_operand.hbm [shape: f32[16,128], index: 2, kind: output, shape index: {}]  }
   0x1   :  { %8 = vsyncpa [#allocation6], 0 }
   0x2   :  { %9 = vsyncpa [#allocation4], 0  ;;  %s14_s11 = sshll.u32 %s287_s0, 4  ;;  %s249_s12 = smov [#allocation2]   ;;  %s15_s11 = int_to_ptr.hbm [resolvable:$true] %s14_s11 }
   0x3   :  { %s16_s13 = sshll.u32 %s249_s12, 4  ;;  %s27_s16 = sshll.u32 %s288_s1, 4  ;;  %s17_s13 = int_to_ptr.vmem [resolvable:$true] %s16_s13  ;;  %s28_s16 = int_to_ptr.hbm [resolvable:$true] %s27_s16 }
   0x4   :  { %s250_s17 = smov 128   ;;  %s251_s18 = smov 8  }
   0x5   :  { %22 = dma.hbm_to_vmem [thread:$0]  %s15_s11, 256, %s17_s13, [#allocation3], %s250_s17, %s250_s17, %s251_s18  }
   0x6   :  { %s252_s19 = smov [#allocation5]  }
   0x7   :  { %s29_s20 = sshll.u32 %s252_s19, 4  ;;  %s30_s20 = int_to_ptr.vmem [resolvable:$true] %s29_s20 }
   0x8   :  { %35 = dma.hbm_to_vmem [thread:$0]  %s28_s16, 2048, %s30_s20, [#allocation6], %s250_s17, %s250_s17, %s251_s18  }
   0x9   :  { %243 = dma.done.wait [#allocation3], 256  }
   0xa   :  { %244 = vsyncadd [#allocation3], 4294967040 }
   0xb   :  { %245 = dma.done.wait [#allocation6], 2048  }
   0xc   :  { %246 = vsyncadd [#allocation6], 4294965248  ;;  %v61_v0 = vld [vmem:[#allocation5 + $0x78] sm:$0xff]  ;;  %v60_v1 = vld [vmem:[#allocation5 + $0x70] sm:$0xff]  ;;  %s253_s0 = smov [#allocation7]   ;;  %s130_s23 = sshll.u32 %s289_s2, 4  ;;  %s131_s23 = int_to_ptr.hbm [resolvable:$true] %s130_s23 }
   0xd   :  { %62 = vmatpush.xpose.msra.mxu0 %v61_v0  ;;  %146 = vmatpush.xpose.msra.mxu2 %v61_v0  ;;  %v59_v2 = vld [vmem:[#allocation5 + $0x68] sm:$0xff]  ;;  %v58_v3 = vld [vmem:[#allocation5 + $0x60] sm:$0xff]  ;;  %v57_v4 = vld [vmem:[#allocation5 + $0x58] sm:$0xff]  ;;  %s128_s1 = sshll.u32 %s253_s0, 4  ;;  %s129_s1 = int_to_ptr.vmem [resolvable:$true] %s128_s1 }
   0xe   :  { %89 = vmatpush.msra.mxu1 %v61_v0  ;;  %v56_v5 = vld [vmem:[#allocation5 + $0x50] sm:$0xff]  ;;  %v55_v6 = vld [vmem:[#allocation5 + $0x48] sm:$0xff]  ;;  %v54_v7 = vld [vmem:[#allocation5 + $0x40] sm:$0xff] }
   0xf   :  { %v53_v8 = vld [vmem:[#allocation5 + $0x38] sm:$0xff]  ;;  %v52_v9 = vld [vmem:[#allocation5 + $0x30] sm:$0xff]  ;;  %v51_v10 = vld [vmem:[#allocation5 + $0x28] sm:$0xff] }
  0x10   :  { %90 = vmatpush.msra.mxu1 %v60_v1  ;;  %v50_v11 = vld [vmem:[#allocation5 + $0x20] sm:$0xff]  ;;  %v49_v12 = vld [vmem:[#allocation5 + $0x18] sm:$0xff]  ;;  %v48_v13 = vld [vmem:[#allocation5 + $0x10] sm:$0xff] }
  0x11   :  { %63 = vmatpush.xpose.msra.mxu0 %v60_v1  ;;  %147 = vmatpush.xpose.msra.mxu2 %v60_v1  ;;  %v47_v14 = vld [vmem:[#allocation5 + $0x8] sm:$0xff]  ;;  %v46_v15 = vld [vmem:[#allocation5] sm:$0xff]  ;;  %v44_v16 = vld [vmem:[#allocation2] sm:$0xff] }
  0x12   :  { %91 = vmatpush.msra.mxu1 %v59_v2  ;;  %v45_v17 = vld [vmem:[#allocation2 + $0x8] sm:$0xff] }
  0x14   :  { %92 = vmatpush.msra.mxu1 %v58_v3 }
  0x15   :  { %64 = vmatpush.xpose.msra.mxu0 %v59_v2  ;;  %148 = vmatpush.xpose.msra.mxu2 %v59_v2 }
  0x16   :  { %93 = vmatpush.msra.mxu1 %v57_v4 }
  0x18   :  { %94 = vmatpush.msra.mxu1 %v56_v5 }
  0x19   :  { %65 = vmatpush.xpose.msra.mxu0 %v58_v3  ;;  %149 = vmatpush.xpose.msra.mxu2 %v58_v3 }
  0x1a   :  { %95 = vmatpush.msra.mxu1 %v55_v6 }
  0x1c   :  { %96 = vmatpush.msra.mxu1 %v54_v7 }
  0x1d   :  { %66 = vmatpush.xpose.msra.mxu0 %v57_v4  ;;  %150 = vmatpush.xpose.msra.mxu2 %v57_v4 }
  0x1e   :  { %97 = vmatpush.msra.mxu1 %v53_v8 }
  0x20   :  { %98 = vmatpush.msra.mxu1 %v52_v9 }
  0x21   :  { %67 = vmatpush.xpose.msra.mxu0 %v56_v5  ;;  %151 = vmatpush.xpose.msra.mxu2 %v56_v5 }
  0x22   :  { %99 = vmatpush.msra.mxu1 %v51_v10 }
  0x24   :  { %100 = vmatpush.msra.mxu1 %v50_v11 }
  0x25   :  { %68 = vmatpush.xpose.msra.mxu0 %v55_v6  ;;  %152 = vmatpush.xpose.msra.mxu2 %v55_v6 }
  0x26   :  { %101 = vmatpush.msra.mxu1 %v49_v12 }
  0x28   :  { %102 = vmatpush.msra.mxu1 %v48_v13 }
  0x29   :  { %69 = vmatpush.xpose.msra.mxu0 %v54_v7  ;;  %153 = vmatpush.xpose.msra.mxu2 %v54_v7 }
  0x2a   :  { %103 = vmatpush.msra.mxu1 %v47_v14 }
  0x2c   :  { %104 = vmatpush.msra.mxu1 %v46_v15 }
  0x2d   :  { %70 = vmatpush.xpose.msra.mxu0 %v53_v8  ;;  %154 = vmatpush.xpose.msra.mxu2 %v53_v8 }
  0x31   :  { %71 = vmatpush.xpose.msra.mxu0 %v52_v9  ;;  %155 = vmatpush.xpose.msra.mxu2 %v52_v9 }
  0x35   :  { %72 = vmatpush.xpose.msra.mxu0 %v51_v10  ;;  %156 = vmatpush.xpose.msra.mxu2 %v51_v10 }
  0x39   :  { %73 = vmatpush.xpose.msra.mxu0 %v50_v11  ;;  %157 = vmatpush.xpose.msra.mxu2 %v50_v11 }
  0x3d   :  { %74 = vmatpush.xpose.msra.mxu0 %v49_v12  ;;  %158 = vmatpush.xpose.msra.mxu2 %v49_v12 }
  0x41   :  { %75 = vmatpush.xpose.msra.mxu0 %v48_v13  ;;  %159 = vmatpush.xpose.msra.mxu2 %v48_v13 }
  0x45   :  { %76 = vmatpush.xpose.msra.mxu0 %v47_v14  ;;  %160 = vmatpush.xpose.msra.mxu2 %v47_v14 }
  0x49   :  { %77 = vmatpush.xpose.msra.mxu0 %v46_v15  ;;  %161 = vmatpush.xpose.msra.mxu2 %v46_v15 }
  0x4c   :  { %78 = vmatmul.f32.vlgmr.msra.gmra.mxu0 %v44_v16  ;;  %81 = vmatmul.f32.vlgmr.msra.gmra.mxu2 %v45_v17 }
  0xc9   :  { %v79_v18 = vpop.f32.mrf.mxu0 }
  0xca   :  { %vm85_vm0 = vcmp.gt.f32.partialorder %v79_v18, 0.0025 }
  0xcb   :  { %144 = vmatmul.msk.f32.vlgmr.msra.gmra.mxu1 %vm85_vm0, %v79_v18  ;;  %v87_v19 = vsel %vm85_vm0, %v79_v18, 0.0 }
  0xcc   :  { %112 = vadd.xlane.f32.xlu0 %v87_v19 }
  0xcf   :  { %v82_v20 = vpop.f32.mrf.mxu2 }
  0xd0   :  { %vm86_vm1 = vcmp.gt.f32.partialorder %v82_v20, 0.0025 }
  0xd1   :  { %v88_v21 = vsel %vm86_vm1, %v82_v20, 0.0 }
  0xd3   :  { %145 = vmatmul.msk.f32.gmra.mxu1 %vm86_vm1, %v82_v20 }
  0xd4   :  { %114 = vadd.xlane.f32.xlu0 %v88_v21 }
 0x13f   :  { %v113_v22 = vpop.xlane.xlu0 %112 }
 0x140   :  { %v116_v23 = vmax.f32 %v113_v22, 1e-12 }
 0x142   :  { %167 = vrcp.f32 %v116_v23 }
 0x147   :  { %v115_v24 = vpop.xlane.xlu0 %114 }
 0x148   :  { %v168_v25 = vpop.eup %167  ;;  %v117_v26 = vmax.f32 %v115_v24, 1e-12  ;;  %v106_v27 = vpop.f32.mrf.mxu1 }
 0x149   :  { %v120_v28 = vmul.f32 %v168_v25, %v106_v27 }
 0x14a   :  { %169 = vrcp.f32 %v117_v26 }
 0x14b   :  { %122 = vst [vmem:[#allocation7] sm:$0xff] %v120_v28 }
 0x150   :  { %v170_v29 = vpop.eup %169  ;;  %v109_v30 = vpop.f32.mrf.mxu1 }
 0x151   :  { %v121_v31 = vmul.f32 %v170_v29, %v109_v30 }
 0x153   :  { %123 = vst [vmem:[#allocation7 + $0x8] sm:$0xff] %v121_v31 }
 0x154   :  { %136 = dma.vmem_to_hbm [thread:$0]  %s129_s1, 256, %s131_s23, [#allocation4], %s250_s17, %s250_s17, %s251_s18  }
 0x155   :  { %247 = dma.done.wait [#allocation4], 256  }
 0x156   :  { %248 = vsyncadd [#allocation4], 4294967040 }
 0x157   :  { %141 = vsyncpa [#allocation3], 1 }
 0x158   :  { %142 = vsyncpa [#allocation6], 1 }
 0x159   :  { %143 = vsyncpa [#allocation4], 1 }

</bundles_post_ra>
